<compile_context>
chip_gen: v7x
topology: tpu7x:2x2x1
jax: 0.10.0
libtpu: 0.0.40
codegen_flags: <defaults>
</compile_context>

<pallas_src>
import math
import functools

import numpy as np
import jax
import jax.numpy as jnp
from jax.experimental import pallas as pl
from jax.experimental.pallas import tpu as pltpu

# ----------------------- configuration (small, structure-preserving) -----------------------
FEA_DIM = 64            # PyTorch default 1024 (scaled down)
DIM = 64                # PyTorch dim_size 512 (scaled down)
HEADS = 8
DIM_HEAD = DIM // 8     # dim // 8
NUM_LANDMARKS = DIM // 2
PINV_ITERS = 6
RES_KERNEL = 33         # NystromAttention residual_conv_kernel
N_CLASSES = 2
LN_EPS = 1e-5
NYS_EPS = 1e-8

VMEM_LIMIT_BYTES = 48 * 1024 * 1024   # explicit scoped-VMEM limit (below v7x's 64 MiB)

_VMEM = pl.BlockSpec(memory_space=pltpu.MemorySpace.VMEM)


# ----------------------------------- fc1 (+ReLU) kernel ------------------------------------
def _fc1_kernel(x_ref, w_ref, b_ref, o_ref):
    y = jnp.dot(x_ref[...], w_ref[...], preferred_element_type=jnp.float32) + b_ref[...]
    o_ref[...] = jnp.maximum(y, 0.0).astype(o_ref.dtype)


# ----------------------- fused TransLayer kernel (LN + Nystrom attention) ------------------
def _translayer_kernel(x_ref, pool_ref, mlr_ref, mlc_ref,
                       ng_ref, nb_ref, qw_ref, kw_ref, vw_ref,
                       ow_ref, ob_ref, resw_ref, o_ref,
                       *, n_p, pad, scale, iters):
    f32 = jnp.float32
    m = NUM_LANDMARKS              # 32
    hm = HEADS * m                 # 256

    x = x_ref[...].astype(f32)                                         # (n_p, 64)

    # ---- pre-norm LayerNorm --------------------------------------------------------------
    mu = jnp.mean(x, axis=-1, keepdims=True)
    var = jnp.mean(jnp.square(x - mu), axis=-1, keepdims=True)
    xn = (x - mu) * jax.lax.rsqrt(var + LN_EPS) * ng_ref[...] + nb_ref[...]

    # ---- qkv projections (lane-dense (n_p, 64) each) --------------------------------------
    q = jnp.dot(xn, qw_ref[...], preferred_element_type=f32)
    k = jnp.dot(xn, kw_ref[...], preferred_element_type=f32)
    v = jnp.dot(xn, vw_ref[...], preferred_element_type=f32)

    # sequence validity mask (zeros for the front padding; pad is a static int)
    row = jax.lax.broadcasted_iota(jnp.int32, (n_p, 1), 0)
    mask = (row >= pad).astype(f32)                                    # (n_p, 1)

    q = q * mask * scale
    k = k * mask
    v = v * mask

    # ---- landmarks via pooling matmul (mask and 1/divisor folded into pool) --------------
    q_l = jnp.dot(pool_ref[...], q, preferred_element_type=f32)        # (m, 64)
    k_l = jnp.dot(pool_ref[...], k, preferred_element_type=f32)        # (m, 64)

    # ---- block-diagonal head-packing masks (iota + shifts; all powers of two) ------------
    r64 = jax.lax.broadcasted_iota(jnp.int32, (DIM, hm), 0)
    c64 = jax.lax.broadcasted_iota(jnp.int32, (DIM, hm), 1)
    bd64 = ((r64 >> 3) == (c64 >> 5)).astype(f32)                      # (64, 256) head blocks

    r256 = jax.lax.broadcasted_iota(jnp.int32, (hm, hm), 0)
    c256 = jax.lax.broadcasted_iota(jnp.int32, (hm, hm), 1)
    seg256 = ((r256 >> 5) == (c256 >> 5)).astype(f32)                  # (256,256) block mask
    eye256 = (r256 == c256).astype(f32)

    r8 = jax.lax.broadcasted_iota(jnp.int32, (HEADS, hm), 0)
    c8 = jax.lax.broadcasted_iota(jnp.int32, (HEADS, hm), 1)
    segexp = (r8 == (c8 >> 5)).astype(f32)                             # (8, 256) seg -> lanes

    # blockdiag(k_l^T) / blockdiag(q_l^T): tile along lanes then mask off cross-head blocks
    kl_bd = jnp.concatenate([k_l.T] * HEADS, axis=1) * bd64            # (64, 256)
    ql_bd = jnp.concatenate([q_l.T] * HEADS, axis=1) * bd64            # (64, 256)

    # ---- similarities, heads packed along lanes (single MXU pass each) -------------------
    sim1 = jnp.dot(q, kl_bd, preferred_element_type=f32)               # (n_p, 256)  q . k_l
    sim2 = jnp.dot(q_l, kl_bd, preferred_element_type=f32)             # (m,   256)  q_l . k_l
    sim3t = jnp.dot(k, ql_bd, preferred_element_type=f32)              # (n_p, 256)  (q_l . k)^T

    neg = -jnp.finfo(f32).max
    mlr = mlr_ref[...]                                                 # (1, 256) landmark valid
    mlc = mlc_ref[...]                                                 # (m, 1)
    sim1 = jnp.where((mask * mlr) > 0.5, sim1, neg)
    sim2 = jnp.where((mlc * mlr) > 0.5, sim2, neg)
    sim3t = jnp.where((mask * mlr) > 0.5, sim3t, neg)

    def seg_softmax(s):
        # softmax over each 32-lane (per-head landmark) segment of the last dim
        mxs = [jnp.max(s[:, h * m:(h + 1) * m], axis=-1, keepdims=True)
               for h in range(HEADS)]
        mx = jnp.concatenate(mxs, axis=-1)                             # (rows, 8)
        e = jnp.exp(s - jnp.dot(mx, segexp, preferred_element_type=f32))
        den = jnp.dot(e, seg256, preferred_element_type=f32)           # per-segment sums, bcast
        return e * pl.reciprocal(den, approx=True)

    attn1 = seg_softmax(sim1)                                          # (n_p, 256)
    attn2 = seg_softmax(sim2)                                          # (m,   256)

    # attn3: softmax over the sequence axis (rows of sim3t)
    mx3 = jnp.max(sim3t, axis=0, keepdims=True)
    e3 = jnp.exp(sim3t - mx3)
    attn3t = e3 * pl.reciprocal(jnp.sum(e3, axis=0, keepdims=True), approx=True)

    # ---- Moore-Penrose pinv of attn2 on one (256,256) block-diagonal matrix --------------
    a2 = jnp.concatenate([attn2] * HEADS, axis=0) * seg256             # blockdiag(attn2_h)
    absa = jnp.abs(a2)
    colsum = jnp.sum(absa, axis=-1, keepdims=True)
    rowsum = jnp.sum(absa, axis=-2, keepdims=True)
    z = a2.T / (jnp.max(colsum) * jnp.max(rowsum))
    for _ in range(iters):
        xz = jnp.dot(a2, z, preferred_element_type=f32)
        t1 = 7.0 * eye256 - xz
        t2 = 15.0 * eye256 - jnp.dot(xz, t1, preferred_element_type=f32)
        t3 = 13.0 * eye256 - jnp.dot(xz, t2, preferred_element_type=f32)
        z = 0.25 * jnp.dot(z, t3, preferred_element_type=f32)

    # ---- out = (attn1 @ pinv(attn2)) @ (attn3 @ v), heads stay block-packed ---------------
    a12 = jnp.dot(attn1, z, preferred_element_type=f32)                # (n_p, 256)
    pT = jnp.dot(v.T, attn3t, preferred_element_type=f32)              # (64, 256) = (attn3@v)^T
    p = (pT * bd64).T                                                  # (256, 64), cross-head=0
    out = jnp.dot(a12, p, preferred_element_type=f32)                  # (n_p, 64)

    # ---- residual depthwise conv along the sequence: Conv2d(h, h, (33,1), groups=h) -------
    zpad = jnp.zeros((RES_KERNEL // 2, DIM), f32)
    vpad = jnp.concatenate([zpad, v, zpad], axis=0)                    # (n_p + 32, 64)
    resw = resw_ref[...]                                               # (33, 64) lane-dense taps
    for t in range(RES_KERNEL):
        out = out + vpad[t:t + n_p, :] * resw[t:t + 1, :]

    # ---- output projection + residual add with the (padded) layer input -------------------
    y = jnp.dot(out, ow_ref[...], preferred_element_type=f32) + ob_ref[...]
    o_ref[...] = (x + y).astype(o_ref.dtype)


def trans_layer(h, p):
    # h: (1, seq, DIM);  returns x + attn(norm(x))
    seq = h.shape[1]
    m = NUM_LANDMARKS
    pad = (m - seq % m) % m                 # NystromAttention pads at the FRONT
    n_p = seq + pad
    l = n_p // m

    x = jnp.concatenate([jnp.zeros((pad, DIM), jnp.float32), h[0]], axis=0)

    # trace-time constants: landmark pooling matrix + landmark validity masks
    mask_np = (np.arange(n_p) >= pad).astype(np.float32)
    msum = mask_np.reshape(m, l).sum(axis=1)
    member = ((np.arange(n_p)[None, :] // l) == np.arange(m)[:, None]).astype(np.float32)
    pool_np = (member * mask_np[None, :] / (msum[:, None] + NYS_EPS)).astype(np.float32)
    ml = (msum > 0).astype(np.float32)
    mlr_np = np.tile(ml, HEADS)[None, :].astype(np.float32)    # (1, heads*m)
    mlc_np = ml[:, None].astype(np.float32)                    # (m, 1)

    # per-head residual-conv taps expanded lane-dense: (33, 64), column c uses head c//8
    resw = jnp.repeat(p['res_w'].T, DIM_HEAD, axis=1)

    qw = p['qkv_w'][:, :DIM]
    kw = p['qkv_w'][:, DIM:2 * DIM]
    vw = p['qkv_w'][:, 2 * DIM:]

    kernel = functools.partial(_translayer_kernel, n_p=n_p, pad=pad,
                               scale=DIM_HEAD ** -0.5, iters=PINV_ITERS)
    y = pl.pallas_call(
        kernel,
        out_shape=jax.ShapeDtypeStruct((n_p, DIM), jnp.float32),
        in_specs=[_VMEM] * 12,
        out_specs=_VMEM,
        compiler_params=pltpu.CompilerParams(vmem_limit_bytes=VMEM_LIMIT_BYTES),
    )(x, jnp.asarray(pool_np), jnp.asarray(mlr_np), jnp.asarray(mlc_np),
      p['norm_g'].reshape(1, DIM), p['norm_b'].reshape(1, DIM),
      qw, kw, vw, p['out_w'], p['out_b'].reshape(1, DIM), resw)

    return y[None, pad:, :]                 # drop front padding (== out[:, -n:] + residual)


# ----------------------------------------- PPEG kernel -------------------------------------
def _ppeg_kernel(f_ref, wpos_ref, w7_ref, w5_ref, w3_ref, b_ref, o_ref, *, H, W):
    # f_ref: (H*W + 6W + 6, C) zero-padded row-major feature map; in-kernel im2col via
    # shifted row-slices (only ONE copy of the feature map was DMA'd from HBM).
    f32 = jnp.float32
    HW = H * W
    off = 3 * W + 3
    wpos = wpos_ref[...]                    # (HW, 1) f32: spatial column index of each row

    def tap(di, dj):                        # 7x7-grid offsets, centre at (3, 3)
        s = off + (di - 3) * W + (dj - 3)
        return f_ref[s:s + HW, :]

    def wmask(d):                           # rows whose spatial column survives a shift d
        wp = wpos + float(d)
        return jnp.where((wp > -0.5) & (wp < W - 0.5), 1.0, 0.0)

    acc = tap(3, 3) + b_ref[...]            # feat + (b7 + b5 + b3)

    # depthwise 7x7 (groups=C); per-dj column mask applied once per column shift
    w7 = w7_ref[...]
    for dj in range(7):
        acc_dj = None
        for di in range(7):
            t = di * 7 + dj
            term = tap(di, dj) * w7[t:t + 1, :]
            acc_dj = term if acc_dj is None else acc_dj + term
        acc = acc + acc_dj * wmask(dj - 3)

    # depthwise 5x5 (groups=C)
    w5 = w5_ref[...]
    for dj in range(5):
        acc_dj = None
        for di in range(5):
            t = di * 5 + dj
            term = tap(di + 1, dj + 1) * w5[t:t + 1, :]
            acc_dj = term if acc_dj is None else acc_dj + term
        acc = acc + acc_dj * wmask(dj - 2)

    # dense 3x3 (groups=1, per the spec): stack the 9 taps -> one (HW, 576) @ (576, C) matmul
    cols = []
    for di in range(3):
        for dj in range(3):
            cols.append(tap(di + 2, dj + 2) * wmask(dj - 1))
    patch = jnp.concatenate(cols, axis=-1)                             # (HW, 9*C)
    acc = acc + jnp.dot(patch, w3_ref[...], preferred_element_type=f32)

    o_ref[...] = acc.astype(o_ref.dtype)


def ppeg(x, p, H, W):
    # x: (1, 1+H*W, C); channels-last (the PyTorch reference is NCHW — wrapper transposes).
    cls_tok = x[:, 0:1, :]
    feat = x[0, 1:, :]                      # (H*W, C), row-major spatial
    HW = H * W
    C = feat.shape[1]

    off = 3 * W + 3
    zpad = jnp.zeros((off, C), jnp.float32)
    fpad = jnp.concatenate([zpad, feat, zpad], axis=0)                 # (HW + 6W + 6, C)
    wpos = jnp.asarray((np.arange(HW) % W).astype(np.float32)[:, None])

    w3flat = p['w3'].reshape(9 * C, C)
    bsum = (p['b7'] + p['b5'] + p['b3']).reshape(1, C)

    out = pl.pallas_call(
        functools.partial(_ppeg_kernel, H=H, W=W),
        out_shape=jax.ShapeDtypeStruct((HW, C), jnp.float32),
        in_specs=[_VMEM] * 6,
        out_specs=_VMEM,
        compiler_params=pltpu.CompilerParams(vmem_limit_bytes=VMEM_LIMIT_BYTES),
    )(fpad, wpos, p['w7'], p['w5'], w3flat, bsum)

    return jnp.concatenate([cls_tok, out[None]], axis=1)


# ------------------------ fused head kernel: LayerNorm(cls) + fc2 --------------------------
def _head_kernel(x_ref, g_ref, b_ref, w_ref, bias_ref, o_ref):
    x = x_ref[...].astype(jnp.float32)
    mu = jnp.mean(x, axis=-1, keepdims=True)
    var = jnp.mean(jnp.square(x - mu), axis=-1, keepdims=True)
    y = (x - mu) * jax.lax.rsqrt(var + LN_EPS) * g_ref[...] + b_ref[...]
    o_ref[...] = (jnp.dot(y, w_ref[...], preferred_element_type=jnp.float32)
                  + bias_ref[...]).astype(o_ref.dtype)


# ---------------------------------------- TransMIL forward ---------------------------------
def transmil_forward(h_in, params):
    # h_in: (B_ori, FEA_DIM) bag of instance features
    B_ori = h_in.shape[0]

    h = pl.pallas_call(                                               # _fc1: Linear + ReLU
        _fc1_kernel,
        out_shape=jax.ShapeDtypeStruct((B_ori, DIM), jnp.float32),
        in_specs=[_VMEM] * 3,
        out_specs=_VMEM,
    )(h_in, params['fc1_w'], params['fc1_b'].reshape(1, DIM))

    h = h[None]                                                       # (1, N, DIM)
    Hn = h.shape[1]
    _H = _W = int(math.ceil(math.sqrt(Hn)))
    add_length = _H * _W - Hn
    h = jnp.concatenate([h, h[:, :add_length, :]], axis=1)            # pad to square by repeat
    h = jnp.concatenate([params['cls_token'], h], axis=1)             # prepend cls token

    h = trans_layer(h, params['layer1'])                              # TransLayer 1 (fused)
    h = ppeg(h, params['ppeg'], _H, _W)                               # PPEG positional encoding
    h = trans_layer(h, params['layer2'])                              # TransLayer 2 (fused)

    cls_row = h[0, 0:1, :]                                            # only row 0 is consumed
    logits = pl.pallas_call(                                          # fused LN(cls) + _fc2
        _head_kernel,
        out_shape=jax.ShapeDtypeStruct((1, N_CLASSES), jnp.float32),
        in_specs=[_VMEM] * 5,
        out_specs=_VMEM,
    )(cls_row, params['norm_g'].reshape(1, DIM), params['norm_b'].reshape(1, DIM),
      params['fc2_w'], params['fc2_b'].reshape(1, N_CLASSES))

    Y_hat = jnp.argmax(logits, axis=1)
    Y_prob = jax.nn.sigmoid(logits)                                   # sigmoid, per the spec
    attn_matrix = jnp.ones((N_CLASSES, B_ori), jnp.float32)           # ones, per the spec
    return logits, Y_prob, Y_hat, attn_matrix, [0]


# --------------------------------------- parameter init ------------------------------------
def init_params(key):
    ks = jax.random.split(key, 16)

    def nrm(k, shape, s=0.05):
        return (s * jax.random.normal(k, shape)).astype(jnp.float32)

    def trans_layer_params(k):
        kk = jax.random.split(k, 4)
        return {
            'norm_g': jnp.ones((DIM,), jnp.float32),
            'norm_b': jnp.zeros((DIM,), jnp.float32),
            'qkv_w': nrm(kk[0], (DIM, 3 * DIM)),          # to_qkv (bias=False)
            'out_w': nrm(kk[1], (DIM, DIM)),              # to_out
            'out_b': nrm(kk[2], (DIM,)),
            'res_w': nrm(kk[3], (HEADS, RES_KERNEL)),     # Conv2d(heads,heads,(33,1),groups=heads)
        }

    return {
        'fc1_w': nrm(ks[0], (FEA_DIM, DIM)),
        'fc1_b': nrm(ks[1], (DIM,)),
        'cls_token': nrm(ks[2], (1, 1, DIM), 1.0),
        'layer1': trans_layer_params(ks[3]),
        'layer2': trans_layer_params(ks[4]),
        'ppeg': {
            'w7': nrm(ks[5], (49, DIM)),                  # depthwise 7x7 taps, per-channel
            'b7': nrm(ks[6], (DIM,)),
            'w5': nrm(ks[7], (25, DIM)),                  # depthwise 5x5
            'b5': nrm(ks[8], (DIM,)),
            'w3': nrm(ks[9], (9, DIM, DIM)),              # dense 3x3 (groups=1): tap->(Cin,Cout)
            'b3': nrm(ks[10], (DIM,)),
        },
        'norm_g': jnp.ones((DIM,), jnp.float32),
        'norm_b': jnp.zeros((DIM,), jnp.float32),
        'fc2_w': nrm(ks[11], (DIM, N_CLASSES)),
        'fc2_b': nrm(ks[12], (N_CLASSES,)),
    }


if __name__ == "__main__":
    key = jax.random.PRNGKey(0)
    kp, kx = jax.random.split(key)
    params = init_params(kp)
    h_in = jax.random.normal(kx, (10, FEA_DIM), dtype=jnp.float32)    # bag of 10 instances
    logits, Y_prob, Y_hat, attn_matrix, extra = transmil_forward(h_in, params)
    jax.block_until_ready((logits, Y_prob, Y_hat, attn_matrix))
    assert logits.shape == (1, N_CLASSES)
    assert Y_prob.shape == (1, N_CLASSES)
    assert Y_hat.shape == (1,)
    assert attn_matrix.shape == (N_CLASSES, 10)
    assert bool(jnp.all(jnp.isfinite(logits)))
    print("KERNEL_OK")
</pallas_src>

<mosaic_0001>
module attributes {stable_mosaic.version = 11 : i64} {
  func.func @_fc1_kernel(%arg0: memref<10x64xf32, #tpu.memory_space<vmem>>, %arg1: memref<64x64xf32, #tpu.memory_space<vmem>>, %arg2: memref<1x64xf32, #tpu.memory_space<vmem>>, %arg3: memref<10x64xf32, #tpu.memory_space<vmem>>) attributes {dimension_semantics = [], scalar_prefetch = 0 : i64, scratch_operands = 0 : i64, tpu.core_type = #tpu.core_type<tc>} {
    %c0 = arith.constant 0 : index
    %c0_0 = arith.constant 0 : index
    %0 = vector.load %arg0[%c0, %c0_0] : memref<10x64xf32, #tpu.memory_space<vmem>>, vector<10x64xf32>
    %c0_1 = arith.constant 0 : index
    %c0_2 = arith.constant 0 : index
    %1 = vector.load %arg1[%c0_1, %c0_2] : memref<64x64xf32, #tpu.memory_space<vmem>>, vector<64x64xf32>
    %cst = arith.constant dense<0.000000e+00> : vector<10x64xf32>
    %2 = tpu.matmul %0, %1, %cst {dimension_numbers = #tpu.dot_dimension_numbers<[1], [0], [0], [1], [0, 0, 1, 1], [], []>} : vector<10x64xf32>, vector<64x64xf32>, vector<10x64xf32> -> vector<10x64xf32>
    %c0_3 = arith.constant 0 : index
    %c0_4 = arith.constant 0 : index
    %3 = vector.load %arg2[%c0_3, %c0_4] : memref<1x64xf32, #tpu.memory_space<vmem>>, vector<1x64xf32>
    %4 = vector.broadcast %3 : vector<1x64xf32> to vector<10x64xf32>
    %5 = arith.addf %2, %4 : vector<10x64xf32>
    %cst_5 = arith.constant 0.000000e+00 : f32
    %6 = vector.broadcast %cst_5 : f32 to vector<10x64xf32>
    %7 = arith.maximumf %5, %6 : vector<10x64xf32>
    %c0_6 = arith.constant 0 : index
    %c0_7 = arith.constant 0 : index
    %8 = vector.load %arg3[%c0_6, %c0_7] : memref<10x64xf32, #tpu.memory_space<vmem>>, vector<10x64xf32>
    tpu.vector_store %arg3[%c0_6, %c0_7], %7 {strides = array<i32>} : memref<10x64xf32, #tpu.memory_space<vmem>>, vector<10x64xf32>,
    return
  }
}

</mosaic_0001>

<bundles_post_ra>
// kernel: tpu_custom_call.1
= control target key start
LH: loop header
LB: loop body
LE: loop exit
PB: predicated region body
PF: predicated region fallthrough
CT: control target
= control target key end

     0   :  { %8 = vsyncpa [#allocation3], 0  ;;  %s366_s0 = inlined_call_operand.hbm [shape: f32[10,64], index: 0, kind: input, shape index: {}]   ;;  %s367_s1 = inlined_call_operand.hbm [shape: f32[64,64], index: 1, kind: input, shape index: {}]   ;;  %s368_s2 = inlined_call_operand.vmem [shape: f32[1,64], index: 2, kind: input, shape index: {}]   ;;  %s369_s3 = inlined_call_operand.hbm [shape: f32[10,64], index: 3, kind: output, shape index: {}]  }
   0x1   :  { %9 = vsyncpa [#allocation6], 0 }
   0x2   :  { %10 = vsyncpa [#allocation4], 0  ;;  %s290_s12 = smov [#allocation2]   ;;  %s218_s16 = scalar_lea.hbm %s366_s0, 256 }
   0x3   :  { %s16_s13 = sshll.u32 %s290_s12, 4  ;;  %p219_p0 = scmp.ne.s32.totalorder %s366_s0, %s218_s16  ;;  %s17_s13 = int_to_ptr.vmem [resolvable:$true] %s16_s13 }
   0x4   :  { %p222_p1 = scmp.lt.u32.totalorder %s218_s16, %s366_s0 }
   0x6   :  { %p224_p2 = pnand %p222_p1, %p219_p0 }
   0x8   :  { %227 = shalt.err (!%p224_p2)
}
   0x9   :  { %s228_s21 = scalar_lea.vmem %s17_s13, 256  ;;  %p233_p4 = scmp.lt.s32.totalorder %s17_s13, %s17_s13 }
   0xa   :  { %p229_p3 = scmp.ne.s32.totalorder %s17_s13, %s228_s21  ;;  %p234_p5 = scmp.lt.s32.totalorder %s228_s21, %s228_s21 }
   0xc   :  { %p235_p6 = por %p234_p5, %p233_p4 }
   0xe   :  { %p236_p7 = pnand %p235_p6, %p229_p3 }
  0x10   :  { %239 = shalt.err (!%p236_p7)
}
  0x11   :  { %s291_s22 = smov 128   ;;  %s292_s23 = smov 8  }
  0x12   :  { %22 = dma.hbm_to_vmem [thread:$0]  %s366_s0, 256, %s17_s13, [#allocation3], %s291_s22, %s291_s22, %s292_s23  }
  0x13   :  { %s293_s26 = smov [#allocation5]   ;;  %s240_s30 = scalar_lea.hbm %s367_s1, 1024 }
  0x14   :  { %s28_s27 = sshll.u32 %s293_s26, 4  ;;  %p241_p8 = scmp.ne.s32.totalorder %s367_s1, %s240_s30  ;;  %s29_s27 = int_to_ptr.vmem [resolvable:$true] %s28_s27 }
  0x15   :  { %p244_p9 = scmp.lt.u32.totalorder %s240_s30, %s367_s1 }
  0x17   :  { %p246_p10 = pnand %p244_p9, %p241_p8 }
  0x19   :  { %249 = shalt.err (!%p246_p10)
}
  0x1a   :  { %s250_s8 = scalar_lea.vmem %s29_s27, 1024  ;;  %p255_p12 = scmp.lt.s32.totalorder %s29_s27, %s29_s27 }
  0x1b   :  { %p251_p11 = scmp.ne.s32.totalorder %s29_s27, %s250_s8  ;;  %p256_p13 = scmp.lt.s32.totalorder %s250_s8, %s250_s8 }
  0x1d   :  { %p257_p0 = por %p256_p13, %p255_p12 }
  0x1f   :  { %p258_p1 = pnand %p257_p0, %p251_p11 }
  0x21   :  { %261 = shalt.err (!%p258_p1)
}
  0x22   :  { %34 = dma.hbm_to_vmem [thread:$0]  %s367_s1, 1024, %s29_s27, [#allocation6], %s291_s22, %s291_s22, %s292_s23  }
  0x23   :  { %284 = dma.done.wait [#allocation3], 256  }
  0x24   :  { %285 = vsyncadd [#allocation3], 4294967040 }
  0x25   :  { %286 = dma.done.wait [#allocation6], 1024  }
  0x26   :  { %287 = vsyncadd [#allocation6], 4294966272  ;;  %v45_v0 = vld [vmem:[#allocation5] sm:$0xff]  ;;  %v46_v1 = vld [vmem:[#allocation5 + $0x8] sm:$0xff]  ;;  %vm60_vm0 = vcmask 523264   ;;  %s294_s11 = smov [#allocation7]  }
  0x27   :  { %v47_v2 = vld [vmem:[#allocation5 + $0x10] sm:$0xff]  ;;  %v197_v3 = vpack.c.bf16 %v46_v1, %v45_v0  ;;  %v48_v4 = vld [vmem:[#allocation5 + $0x18] sm:$0xff]  ;;  %v49_v6 = vld [vmem:[#allocation5 + $0x20] sm:$0xff]  ;;  %s152_s12 = sshll.u32 %s294_s11, 4  ;;  %vm145_vm1 = vcmask 517120   ;;  %s153_s12 = int_to_ptr.vmem [resolvable:$true] %s152_s12 }
  0x28   :  { %v201_v5 = vpack.c.bf16 %v48_v4, %v47_v2  ;;  %v50_v7 = vld [vmem:[#allocation5 + $0x28] sm:$0xff]  ;;  %v43_v8 = vld [vmem:[#allocation2] sm:$0xff]  ;;  %v52_v11 = vld [vmem:[#allocation5 + $0x38] sm:$0xff]  ;;  %s262_s13 = scalar_lea.vmem %s153_s12, 256  ;;  %p267_p3 = scmp.lt.s32.totalorder %s153_s12, %s153_s12 }
  0x29   :  { %198 = vmatprep.subr.bf16.mxu0 %v197_v3  ;;  %194 = vmatprep.mubr.msk.f32.mxu0 %vm60_vm0, %v43_v8  ;;  %v205_v9 = vpack.c.bf16 %v50_v7, %v49_v6  ;;  %v51_v10 = vld [vmem:[#allocation5 + $0x30] sm:$0xff]  ;;  %v44_v13 = vld [vmem:[#allocation2 + $0x8] sm:$0x3]  ;;  %p263_p2 = scmp.ne.s32.totalorder %s153_s12, %s262_s13  ;;  %p268_p4 = scmp.lt.s32.totalorder %s262_s13, %s262_s13 }
  0x2a   :  { %200 = vmatpush3.bf16.msra.mxu0 %v197_v3  ;;  %v209_v12 = vpack.c.bf16 %v52_v11, %v51_v10  ;;  %v165_v14 = vld [vmem:[%s368_s2] ss:$0 sm:$0xff] }
  0x2b   :  { %202 = vmatprep.subr.bf16.mxu0 %v201_v5  ;;  %p269_p5 = por %p268_p4, %p267_p3 }
  0x2d   :  { %p270_p6 = pnand %p269_p5, %p263_p2 }
  0x2e   :  { %204 = vmatpush3.bf16.msra.mxu0 %v201_v5 }
  0x2f   :  { %206 = vmatprep.subr.bf16.mxu0 %v205_v9 }
  0x32   :  { %208 = vmatpush3.bf16.msra.mxu0 %v205_v9 }
  0x33   :  { %210 = vmatprep.subr.bf16.mxu0 %v209_v12 }
  0x36   :  { %212 = vmatpush3.bf16.msra.mxu0 %v209_v12 }
  0x39   :  { %195 = vmatmul.mubr.msk.f32.vlgmr.msra.gmra.mrb[0].mxu0 %vm60_vm0, %v44_v13 }
 0x10c   :  { %v196_v15 = vpop.f32.mrb[0].mxu0 }
 0x10d   :  { %v139_v16 = vadd.f32 %v196_v15, %v165_v14  ;;  %v133_v17 = vpop.f32.mrb[1].mxu0 }
 0x10e   :  { %v134_v18 = vadd.f32 %v165_v14, %v133_v17 }
 0x10f   :  { %v143_v19 = vmax.f32 %v139_v16, 0.0 }
 0x110   :  { %v142_v20 = vmax.f32 %v134_v18, 0.0 }
 0x111   :  { %146 = vst.msk [vmem:[#allocation7 + $0x8] sm:$0x3] %vm145_vm1, %v143_v19 }
 0x112   :  { %144 = vst.msk [vmem:[#allocation7] sm:$0xff] %vm60_vm0, %v142_v20 }
 0x113   :  { %273 = shalt.err (!%p270_p6)
}
 0x114   :  { %s274_s15 = scalar_lea.hbm %s369_s3, 256 }
 0x115   :  { %p275_p7 = scmp.ne.s32.totalorder %s369_s3, %s274_s15  ;;  %p278_p8 = scmp.lt.u32.totalorder %s274_s15, %s369_s3 }
 0x117   :  { %p280_p9 = pnand %p278_p8, %p275_p7 }
 0x119   :  { %283 = shalt.err (!%p280_p9)
}
 0x11a   :  { %158 = dma.vmem_to_hbm [thread:$0]  %s153_s12, 256, %s369_s3, [#allocation4], %s291_s22, %s291_s22, %s292_s23  }
 0x11b   :  { %288 = dma.done.wait [#allocation4], 256  }
 0x11c   :  { %289 = vsyncadd [#allocation4], 4294967040 }
 0x11d   :  { %162 = vsyncpa [#allocation3], 1 }
 0x11e   :  { %163 = vsyncpa [#allocation6], 1 }
 0x11f   :  { %164 = vsyncpa [#allocation4], 1 }

</bundles_post_ra>
